<compile_context>
chip_gen: v5e
topology: v5e:2x2
jax: 0.10.0
libtpu: 0.0.40
codegen_flags: <defaults>
</compile_context>

<pallas_src>
import functools

import numpy as np
import jax
import jax.numpy as jnp
from jax.experimental import pallas as pl
from jax.experimental.pallas import tpu as pltpu

EPS = 1e-5
NEG_SLOPE = 0.01


def _fused_stack_kernel(x_ref, w_ref, b_ref, o_ref, xpad_ref):
    """All `num_convs` Conv(3x3)+BN(eval)+LeakyReLU blocks for one batch elem.

    x_ref    : (1, H, W*C)      f32  input (rows as W*C lanes)
    w_ref    : (L*3, W*C, W*C)  bf16 block-banded BN-folded weights (l*3 + dh)
    b_ref    : (L, 1, W*C)      f32  folded bias, tiled across W
    o_ref    : (1, H, W*C)      f32  output
    xpad_ref : (H+2, W*C)       f32  scratch: activation with zero halo rows
    """
    _, H, WC = x_ref.shape
    L = w_ref.shape[0] // 3

    # Zero halo rows (row padding); interior is overwritten below.
    xpad_ref[...] = jnp.zeros_like(xpad_ref)
    xpad_ref[1:H + 1, :] = x_ref[0]

    for l in range(L):                       # static unroll over fused layers
        # 3x3 conv == sum over kernel-row dh of one MXU matmul against a
        # block-banded weight matrix (width padding baked into the band).
        acc = jnp.dot(xpad_ref[0:H, :].astype(jnp.bfloat16),
                      w_ref[3 * l],
                      preferred_element_type=jnp.float32)
        for dh in (1, 2):
            acc = acc + jnp.dot(xpad_ref[dh:dh + H, :].astype(jnp.bfloat16),
                                w_ref[3 * l + dh],
                                preferred_element_type=jnp.float32)

        # Folded conv-bias + BatchNorm(eval), then LeakyReLU.
        # Dropout2d is identity in eval mode.
        y = acc + b_ref[l]
        y = jnp.where(y >= 0, y, NEG_SLOPE * y)

        if l + 1 < L:
            # Intermediate activation stays in VMEM (full-lane-width store).
            xpad_ref[1:H + 1, :] = y
        else:
            o_ref[0] = y.astype(o_ref.dtype)


def _stacked_conv_pallas(x_flat, w_all, b_all):
    """One fused pallas_call over the whole stack; grid over batch."""
    N, H, WC = x_flat.shape
    L3 = w_all.shape[0]
    L = L3 // 3
    return pl.pallas_call(
        _fused_stack_kernel,
        out_shape=jax.ShapeDtypeStruct((N, H, WC), jnp.float32),
        grid=(N,),
        in_specs=[
            pl.BlockSpec((1, H, WC), lambda n: (n, 0, 0)),
            pl.BlockSpec((L3, WC, WC), lambda n: (0, 0, 0)),
            pl.BlockSpec((L, 1, WC), lambda n: (0, 0, 0)),
        ],
        out_specs=pl.BlockSpec((1, H, WC), lambda n: (n, 0, 0)),
        scratch_shapes=[pltpu.VMEM((H + 2, WC), jnp.float32)],
        compiler_params=pltpu.CompilerParams(
            dimension_semantics=("parallel",)),
    )(x_flat, w_all, b_all)


def init_stacked_conv_params(key, input_channels, output_channels, num_convs):
    """Deterministic synthetic parameters (PyTorch-layout) for the stack."""
    params = []
    cin = input_channels
    for _ in range(num_convs):
        key, kw, kb, kg, kbe, km, kv = jax.random.split(key, 7)
        w_oihw = 0.1 * jax.random.normal(kw, (output_channels, cin, 3, 3),
                                         jnp.float32)
        params.append(dict(
            w_hwio=jnp.transpose(w_oihw, (2, 3, 1, 0)),      # OIHW -> HWIO
            bias=0.1 * jax.random.normal(kb, (output_channels,), jnp.float32),
            gamma=1.0 + 0.1 * jax.random.normal(kg, (output_channels,),
                                                jnp.float32),
            beta=0.1 * jax.random.normal(kbe, (output_channels,), jnp.float32),
            mean=0.1 * jax.random.normal(km, (output_channels,), jnp.float32),
            var=0.5 + jnp.abs(jax.random.normal(kv, (output_channels,),
                                                jnp.float32)),
        ))
        cin = output_channels
    return params


def fold_and_pack_params(params, input_channels, output_channels, W):
    """Fold BN(eval)+bias into weights (f32), build block-banded matrices.

    Returns:
      w_all: (L*3, W*C, W*C) bf16 -- band[l*3+dh][wq*C+c, w*C+co] =
             scaled_weight[dh, dw=wq-w+1, c, co]  (0 outside the 3-wide band;
             width zero-padding is implicit via the missing out-of-range rows).
      b_all: (L, 1, W*C) f32 -- folded bias tiled across W.
      C    : padded per-pixel channel count = max(Cin, Cout).
    """
    L = len(params)
    C = max(input_channels, output_channels)
    bands, biases = [], []
    for idx, p in enumerate(params):
        cin_l = input_channels if idx == 0 else output_channels
        scale = p["gamma"].astype(jnp.float32) * jax.lax.rsqrt(
            p["var"].astype(jnp.float32) + EPS)                      # (Cout,)
        w = p["w_hwio"].astype(jnp.float32) * scale[None, None, None, :]
        b = (p["bias"] - p["mean"]) * scale + p["beta"]
        # Pad cin -> C and cout -> C with zeros (padded channels stay 0
        # through the stack: zero weight rows/cols + zero bias).
        w = jnp.pad(w, ((0, 0), (0, 0), (0, C - cin_l),
                        (0, C - output_channels)))
        b = jnp.pad(b, (0, C - output_channels))
        w_np = np.asarray(w)                                  # (3, 3, C, C)
        band = np.zeros((3, W * C, W * C), np.float32)
        for dh in range(3):
            for w_out in range(W):
                for dw in range(3):
                    wq = w_out - 1 + dw          # input column (pre-padding)
                    if 0 <= wq < W:
                        band[dh,
                             wq * C:(wq + 1) * C,
                             w_out * C:(w_out + 1) * C] = w_np[dh, dw]
        bands.append(band)
        biases.append(np.tile(np.asarray(b), W))              # (W*C,)
    w_all = jnp.asarray(np.concatenate(bands, axis=0)).astype(jnp.bfloat16)
    b_all = jnp.asarray(np.stack(biases)).reshape(L, 1, W * C)
    return w_all, b_all.astype(jnp.float32), C


@functools.partial(jax.jit, static_argnames=("out_channels",))
def stacked_conv_layers(x_nchw, w_all, b_all, out_channels):
    """Forward of StackedConvLayers. Input/output are NCHW like PyTorch."""
    N, Cin, H, W = x_nchw.shape
    C = w_all.shape[1] // W
    x = jnp.transpose(x_nchw, (0, 2, 3, 1))                    # NCHW -> NHWC
    x = jnp.pad(x, ((0, 0), (0, 0), (0, 0), (0, C - Cin)))     # pad channels
    x = x.reshape(N, H, W * C).astype(jnp.float32)             # lane-dense rows
    y = _stacked_conv_pallas(x, w_all, b_all)                  # (N, H, W*C)
    y = y.reshape(N, H, W, C)[..., :out_channels]
    return jnp.transpose(y, (0, 3, 1, 2))                      # NHWC -> NCHW


def _reference(x_nchw, params):
    """Pure-JAX f32 reference (lax.conv) for a sanity check."""
    x = x_nchw
    for p in params:
        w_oihw = jnp.transpose(p["w_hwio"], (3, 2, 0, 1))
        y = jax.lax.conv_general_dilated(
            x, w_oihw, window_strides=(1, 1), padding=((1, 1), (1, 1)),
            dimension_numbers=("NCHW", "OIHW", "NCHW"))
        y = y + p["bias"][None, :, None, None]
        inv = jax.lax.rsqrt(p["var"] + EPS)
        y = ((y - p["mean"][None, :, None, None]) * inv[None, :, None, None]
             * p["gamma"][None, :, None, None] + p["beta"][None, :, None, None])
        x = jnp.where(y >= 0, y, NEG_SLOPE * y)
    return x


if __name__ == "__main__":
    key = jax.random.PRNGKey(0)
    key, kx = jax.random.split(key)

    # StackedConvLayers(input_feature_channels=4, output_feature_channels=8,
    #                   num_convs=2) at small spatial size.
    N, Cin, H, W = 2, 4, 16, 16
    Cout, num_convs = 8, 2

    x = jax.random.normal(kx, (N, Cin, H, W), jnp.float32)
    params = init_stacked_conv_params(key, Cin, Cout, num_convs)
    w_all, b_all, _ = fold_and_pack_params(params, Cin, Cout, W)

    out = stacked_conv_layers(x, w_all, b_all, Cout)
    out = jax.block_until_ready(out)
    assert out.shape == (N, Cout, H, W), out.shape

    # bf16 MXU operands -> compare against the exact f32 reference with a
    # correspondingly loosened tolerance.
    ref = _reference(x, params)
    assert jnp.allclose(out, ref, rtol=3e-2, atol=3e-2), "mismatch vs reference"

    print("KERNEL_OK")
</pallas_src>

<mosaic_0001>
module attributes {stable_mosaic.version = 11 : i64} {
  func.func @_fused_stack_kernel(%arg0: i32, %arg1: memref<1x16x128xf32, #tpu.memory_space<vmem>>, %arg2: memref<6x128x128xbf16, #tpu.memory_space<vmem>>, %arg3: memref<2x1x128xf32, #tpu.memory_space<vmem>>, %arg4: memref<1x16x128xf32, #tpu.memory_space<vmem>>, %arg5: memref<18x128xf32, #tpu.memory_space<vmem>>) attributes {dimension_semantics = [#tpu.dimension_semantics<parallel>], iteration_bounds = array<i64: 2>, scalar_prefetch = 0 : i64, scratch_operands = 1 : i64, tpu.core_type = #tpu.core_type<tc>, window_params = [{transform_indices = @transform_0, window_bounds = array<i64: 1, 16, 128>}, {pipeline_mode = #tpu.pipeline_mode<synchronous>, transform_indices = @transform_1, window_bounds = array<i64: 6, 128, 128>}, {pipeline_mode = #tpu.pipeline_mode<synchronous>, transform_indices = @transform_2, window_bounds = array<i64: 2, 1, 128>}, {transform_indices = @transform_3, window_bounds = array<i64: 1, 16, 128>}]} {
    %cst = arith.constant 0.000000e+00 : f32
    %0 = vector.broadcast %cst : f32 to vector<18x128xf32>
    %c0 = arith.constant 0 : index
    %c0_0 = arith.constant 0 : index
    %1 = vector.load %arg5[%c0, %c0_0] : memref<18x128xf32, #tpu.memory_space<vmem>>, vector<18x128xf32>
    tpu.vector_store %arg5[%c0, %c0_0], %0 {strides = array<i32>} : memref<18x128xf32, #tpu.memory_space<vmem>>, vector<18x128xf32>,
    %c0_1 = arith.constant 0 : index
    %c0_2 = arith.constant 0 : index
    %c0_3 = arith.constant 0 : index
    %2 = vector.load %arg1[%c0_1, %c0_2, %c0_3] : memref<1x16x128xf32, #tpu.memory_space<vmem>>, vector<1x16x128xf32>
    %3 = vector.shape_cast %2 : vector<1x16x128xf32> to vector<16x128xf32>
    %c1 = arith.constant 1 : index
    %c0_4 = arith.constant 0 : index
    %4 = vector.load %arg5[%c1, %c0_4] : memref<18x128xf32, #tpu.memory_space<vmem>>, vector<16x128xf32>
    tpu.vector_store %arg5[%c1, %c0_4], %3 {strides = array<i32>} : memref<18x128xf32, #tpu.memory_space<vmem>>, vector<16x128xf32>,
    %c0_5 = arith.constant 0 : index
    %c0_6 = arith.constant 0 : index
    %5 = vector.load %arg5[%c0_5, %c0_6] : memref<18x128xf32, #tpu.memory_space<vmem>>, vector<16x128xf32>
    %6 = arith.truncf %5 : vector<16x128xf32> to vector<16x128xbf16>
    %c0_7 = arith.constant 0 : index
    %c0_8 = arith.constant 0 : index
    %c0_9 = arith.constant 0 : index
    %7 = vector.load %arg2[%c0_7, %c0_8, %c0_9] : memref<6x128x128xbf16, #tpu.memory_space<vmem>>, vector<1x128x128xbf16>
    %8 = vector.shape_cast %7 : vector<1x128x128xbf16> to vector<128x128xbf16>
    %cst_10 = arith.constant dense<0.000000e+00> : vector<16x128xf32>
    %9 = tpu.matmul %6, %8, %cst_10 {dimension_numbers = #tpu.dot_dimension_numbers<[1], [0], [0], [1], [0, 0, 1, 1], [], []>} : vector<16x128xbf16>, vector<128x128xbf16>, vector<16x128xf32> -> vector<16x128xf32>
    %c1_11 = arith.constant 1 : index
    %c0_12 = arith.constant 0 : index
    %10 = vector.load %arg5[%c1_11, %c0_12] : memref<18x128xf32, #tpu.memory_space<vmem>>, vector<16x128xf32>
    %11 = arith.truncf %10 : vector<16x128xf32> to vector<16x128xbf16>
    %c1_13 = arith.constant 1 : index
    %c0_14 = arith.constant 0 : index
    %c0_15 = arith.constant 0 : index
    %12 = vector.load %arg2[%c1_13, %c0_14, %c0_15] : memref<6x128x128xbf16, #tpu.memory_space<vmem>>, vector<1x128x128xbf16>
    %13 = vector.shape_cast %12 : vector<1x128x128xbf16> to vector<128x128xbf16>
    %cst_16 = arith.constant dense<0.000000e+00> : vector<16x128xf32>
    %14 = tpu.matmul %11, %13, %cst_16 {dimension_numbers = #tpu.dot_dimension_numbers<[1], [0], [0], [1], [0, 0, 1, 1], [], []>} : vector<16x128xbf16>, vector<128x128xbf16>, vector<16x128xf32> -> vector<16x128xf32>
    %15 = arith.addf %9, %14 : vector<16x128xf32>
    %c2 = arith.constant 2 : index
    %c0_17 = arith.constant 0 : index
    %16 = vector.load %arg5[%c2, %c0_17] : memref<18x128xf32, #tpu.memory_space<vmem>>, vector<16x128xf32>
    %17 = arith.truncf %16 : vector<16x128xf32> to vector<16x128xbf16>
    %c2_18 = arith.constant 2 : index
    %c0_19 = arith.constant 0 : index
    %c0_20 = arith.constant 0 : index
    %18 = vector.load %arg2[%c2_18, %c0_19, %c0_20] : memref<6x128x128xbf16, #tpu.memory_space<vmem>>, vector<1x128x128xbf16>
    %19 = vector.shape_cast %18 : vector<1x128x128xbf16> to vector<128x128xbf16>
    %cst_21 = arith.constant dense<0.000000e+00> : vector<16x128xf32>
    %20 = tpu.matmul %17, %19, %cst_21 {dimension_numbers = #tpu.dot_dimension_numbers<[1], [0], [0], [1], [0, 0, 1, 1], [], []>} : vector<16x128xbf16>, vector<128x128xbf16>, vector<16x128xf32> -> vector<16x128xf32>
    %21 = arith.addf %15, %20 : vector<16x128xf32>
    %c0_22 = arith.constant 0 : index
    %c0_23 = arith.constant 0 : index
    %c0_24 = arith.constant 0 : index
    %22 = vector.load %arg3[%c0_22, %c0_23, %c0_24] : memref<2x1x128xf32, #tpu.memory_space<vmem>>, vector<1x1x128xf32>
    %23 = vector.shape_cast %22 : vector<1x1x128xf32> to vector<1x128xf32>
    %24 = vector.broadcast %23 : vector<1x128xf32> to vector<16x128xf32>
    %25 = arith.addf %21, %24 : vector<16x128xf32>
    %cst_25 = arith.constant 0.000000e+00 : f32
    %26 = vector.broadcast %cst_25 : f32 to vector<16x128xf32>
    %27 = arith.cmpf oge, %25, %26 : vector<16x128xf32>
    %cst_26 = arith.constant 0.00999999977 : f32
    %28 = vector.broadcast %cst_26 : f32 to vector<16x128xf32>
    %29 = arith.mulf %28, %25 : vector<16x128xf32>
    %30 = arith.select %27, %25, %29 : vector<16x128xi1>, vector<16x128xf32>
    %c1_27 = arith.constant 1 : index
    %c0_28 = arith.constant 0 : index
    %31 = vector.load %arg5[%c1_27, %c0_28] : memref<18x128xf32, #tpu.memory_space<vmem>>, vector<16x128xf32>
    tpu.vector_store %arg5[%c1_27, %c0_28], %30 {strides = array<i32>} : memref<18x128xf32, #tpu.memory_space<vmem>>, vector<16x128xf32>,
    %c0_29 = arith.constant 0 : index
    %c0_30 = arith.constant 0 : index
    %32 = vector.load %arg5[%c0_29, %c0_30] : memref<18x128xf32, #tpu.memory_space<vmem>>, vector<16x128xf32>
    %33 = arith.truncf %32 : vector<16x128xf32> to vector<16x128xbf16>
    %c3 = arith.constant 3 : index
    %c0_31 = arith.constant 0 : index
    %c0_32 = arith.constant 0 : index
    %34 = vector.load %arg2[%c3, %c0_31, %c0_32] : memref<6x128x128xbf16, #tpu.memory_space<vmem>>, vector<1x128x128xbf16>
    %35 = vector.shape_cast %34 : vector<1x128x128xbf16> to vector<128x128xbf16>
    %cst_33 = arith.constant dense<0.000000e+00> : vector<16x128xf32>
    %36 = tpu.matmul %33, %35, %cst_33 {dimension_numbers = #tpu.dot_dimension_numbers<[1], [0], [0], [1], [0, 0, 1, 1], [], []>} : vector<16x128xbf16>, vector<128x128xbf16>, vector<16x128xf32> -> vector<16x128xf32>
    %c1_34 = arith.constant 1 : index
    %c0_35 = arith.constant 0 : index
    %37 = vector.load %arg5[%c1_34, %c0_35] : memref<18x128xf32, #tpu.memory_space<vmem>>, vector<16x128xf32>
    %38 = arith.truncf %37 : vector<16x128xf32> to vector<16x128xbf16>
    %c4 = arith.constant 4 : index
    %c0_36 = arith.constant 0 : index
    %c0_37 = arith.constant 0 : index
    %39 = vector.load %arg2[%c4, %c0_36, %c0_37] : memref<6x128x128xbf16, #tpu.memory_space<vmem>>, vector<1x128x128xbf16>
    %40 = vector.shape_cast %39 : vector<1x128x128xbf16> to vector<128x128xbf16>
    %cst_38 = arith.constant dense<0.000000e+00> : vector<16x128xf32>
    %41 = tpu.matmul %38, %40, %cst_38 {dimension_numbers = #tpu.dot_dimension_numbers<[1], [0], [0], [1], [0, 0, 1, 1], [], []>} : vector<16x128xbf16>, vector<128x128xbf16>, vector<16x128xf32> -> vector<16x128xf32>
    %42 = arith.addf %36, %41 : vector<16x128xf32>
    %c2_39 = arith.constant 2 : index
    %c0_40 = arith.constant 0 : index
    %43 = vector.load %arg5[%c2_39, %c0_40] : memref<18x128xf32, #tpu.memory_space<vmem>>, vector<16x128xf32>
    %44 = arith.truncf %43 : vector<16x128xf32> to vector<16x128xbf16>
    %c5 = arith.constant 5 : index
    %c0_41 = arith.constant 0 : index
    %c0_42 = arith.constant 0 : index
    %45 = vector.load %arg2[%c5, %c0_41, %c0_42] : memref<6x128x128xbf16, #tpu.memory_space<vmem>>, vector<1x128x128xbf16>
    %46 = vector.shape_cast %45 : vector<1x128x128xbf16> to vector<128x128xbf16>
    %cst_43 = arith.constant dense<0.000000e+00> : vector<16x128xf32>
    %47 = tpu.matmul %44, %46, %cst_43 {dimension_numbers = #tpu.dot_dimension_numbers<[1], [0], [0], [1], [0, 0, 1, 1], [], []>} : vector<16x128xbf16>, vector<128x128xbf16>, vector<16x128xf32> -> vector<16x128xf32>
    %48 = arith.addf %42, %47 : vector<16x128xf32>
    %c1_44 = arith.constant 1 : index
    %c0_45 = arith.constant 0 : index
    %c0_46 = arith.constant 0 : index
    %49 = vector.load %arg3[%c1_44, %c0_45, %c0_46] : memref<2x1x128xf32, #tpu.memory_space<vmem>>, vector<1x1x128xf32>
    %50 = vector.shape_cast %49 : vector<1x1x128xf32> to vector<1x128xf32>
    %51 = vector.broadcast %50 : vector<1x128xf32> to vector<16x128xf32>
    %52 = arith.addf %48, %51 : vector<16x128xf32>
    %cst_47 = arith.constant 0.000000e+00 : f32
    %53 = vector.broadcast %cst_47 : f32 to vector<16x128xf32>
    %54 = arith.cmpf oge, %52, %53 : vector<16x128xf32>
    %cst_48 = arith.constant 0.00999999977 : f32
    %55 = vector.broadcast %cst_48 : f32 to vector<16x128xf32>
    %56 = arith.mulf %55, %52 : vector<16x128xf32>
    %57 = arith.select %54, %52, %56 : vector<16x128xi1>, vector<16x128xf32>
    %c0_49 = arith.constant 0 : index
    %c0_50 = arith.constant 0 : index
    %c0_51 = arith.constant 0 : index
    %58 = vector.load %arg4[%c0_49, %c0_50, %c0_51] : memref<1x16x128xf32, #tpu.memory_space<vmem>>, vector<1x16x128xf32>
    %59 = vector.shape_cast %58 : vector<1x16x128xf32> to vector<16x128xf32>
    %60 = vector.shape_cast %57 : vector<16x128xf32> to vector<1x16x128xf32>
    tpu.vector_store %arg4[%c0_49, %c0_50, %c0_51], %60 {strides = array<i32>} : memref<1x16x128xf32, #tpu.memory_space<vmem>>, vector<1x16x128xf32>,
    return
  }
  func.func @transform_0(%arg0: i32) -> (i32, i32, i32) {
    %c0_i32 = arith.constant 0 : i32
    %c0_i32_0 = arith.constant 0 : i32
    %c0_i32_1 = arith.constant 0 : i32
    return %arg0, %c0_i32, %c0_i32_0 : i32, i32, i32
  }
  func.func @transform_1(%arg0: i32) -> (i32, i32, i32) {
    %c0_i32 = arith.constant 0 : i32
    %c0_i32_0 = arith.constant 0 : i32
    %c0_i32_1 = arith.constant 0 : i32
    %c0_i32_2 = arith.constant 0 : i32
    return %c0_i32, %c0_i32_0, %c0_i32_1 : i32, i32, i32
  }
  func.func @transform_2(%arg0: i32) -> (i32, i32, i32) {
    %c0_i32 = arith.constant 0 : i32
    %c0_i32_0 = arith.constant 0 : i32
    %c0_i32_1 = arith.constant 0 : i32
    %c0_i32_2 = arith.constant 0 : i32
    return %c0_i32, %c0_i32_0, %c0_i32_1 : i32, i32, i32
  }
  func.func @transform_3(%arg0: i32) -> (i32, i32, i32) {
    %c0_i32 = arith.constant 0 : i32
    %c0_i32_0 = arith.constant 0 : i32
    %c0_i32_1 = arith.constant 0 : i32
    return %arg0, %c0_i32, %c0_i32_0 : i32, i32, i32
  }
}

</mosaic_0001>

<bundles_post_ra>
// kernel: stacked_conv_layers.1
= control target key start
LH: loop header
LB: loop body
LE: loop exit
PB: predicated region body
PF: predicated region fallthrough
CT: control target
= control target key end

     0   :  { %s1131_s12 = smov 0   ;;  %s1305_s0 = inlined_call_operand.vmem [shape: f32[2,16,128], index: 0, kind: input, shape index: {}]   ;;  %s1306_s1 = inlined_call_operand.vmem [shape: bf16[6,128,128], index: 1, kind: input, shape index: {}]   ;;  %s1307_s2 = inlined_call_operand.vmem [shape: f32[2,1,128], index: 2, kind: input, shape index: {}]   ;;  %s1308_s3 = inlined_call_operand.vmem [shape: f32[2,16,128], index: 3, kind: output, shape index: {}]  }
   0x1 LB: > { %s757_s13 = sadd.s32 4294967295, %s1108_s12   ;;  %p761_p0 = scmp.ge.s32.totalorder %s1108_s12, 1  ;;  %s1108_s12 = sphi %s1131_s12, %s13_s12  }
   0x2   : > { %p137_p1 = scmp.lt.s32.totalorder %s1108_s12, 3 }
   0x4   : > { %p138_p2 = pnand %p761_p0, %p137_p1 }
   0x5   : > { %p161_p3 = scmp.lt.s32.totalorder (!%p138_p2), %s757_s13, 1 }
   0x6   : > { %141 = sbr.rel (%p138_p2) target bundleno = 346 (0x15a), region = 32 }
   0xb   : > { %v1058_v0 = vld [vmem:[%s1306_s1 + $0x78] sm:$0xff]  ;;  %v1110_v3 = vmov 0.0   ;;  %v1057_v4 = vld [vmem:[%s1306_s1 + $0x70] sm:$0xff]  ;;  %s1310_s13 = smov (!%p161_p3, %s757_s13), 1  ;;  %v1056_v7 = vld [vmem:[%s1306_s1 + $0x68] sm:$0xff] }
   0xc   : > { %v1050_v1 = vld [vmem:[%s1306_s1 + $0x38] sm:$0xff]  ;;  %171 = vst [vmem:[#allocation2] sm:$0xff] %v1110_v3  ;;  %265 = vmatpush.bf16.msra.mxu0 %v1058_v0  ;;  %v1049_v5 = vld [vmem:[%s1306_s1 + $0x30] sm:$0xff]  ;;  %s1041_s26 = sshll.u32 %s1310_s13, 4  ;;  %v1048_v8 = vld [vmem:[%s1306_s1 + $0x28] sm:$0xff] }
   0xd   : > { %v1066_v2 = vld [vmem:[%s1306_s1 + $0xb8] sm:$0xff]  ;;  %327 = vmatpush.bf16.msra.mxu1 %v1050_v1  ;;  %172 = vst [vmem:[#allocation2 + $0x8] sm:$0xff] %v1110_v3  ;;  %v1065_v6 = vld [vmem:[%s1306_s1 + $0xb0] sm:$0xff]  ;;  %s165_s29 = scalar_lea.vmem %s1305_s0, %s1041_s26  ;;  %v1064_v9 = vld [vmem:[%s1306_s1 + $0xa8] sm:$0xff]  ;;  %s170_s23 = scalar_lea.vmem %s1308_s3, %s1041_s26 }
   0xe   : > { %409 = vmatpush.bf16.msra.mxu2 %v1066_v2  ;;  %173 = vst [vmem:[#allocation2 + $0x10] sm:$0x3] %v1110_v3  ;;  %v174_v10 = vld [vmem:[%s165_s29] sm:$0xff]  ;;  %v175_v11 = vld [vmem:[%s165_s29 + $0x8] sm:$0xff]  ;;  %v1054_v15 = vld [vmem:[%s1306_s1 + $0x58] sm:$0xff] }
   0xf   : > { %176 = vst [vmem:[#allocation2 + $0x1] sm:$0xff] %v174_v10  ;;  %v1055_v12 = vld [vmem:[%s1306_s1 + $0x60] sm:$0xff]  ;;  %v1046_v16 = vld [vmem:[%s1306_s1 + $0x18] sm:$0xff]  ;;  %v1053_v18 = vld [vmem:[%s1306_s1 + $0x50] sm:$0xff]  ;;  %v199_v31 = vpack.c.bf16 %v175_v11, %v174_v10 }
  0x10   : > { %266 = vmatpush.bf16.msra.mxu0 %v1057_v4  ;;  %v1047_v13 = vld [vmem:[%s1306_s1 + $0x20] sm:$0xff]  ;;  %177 = vst [vmem:[#allocation2 + $0x9] sm:$0xff] %v175_v11  ;;  %v1062_v17 = vld [vmem:[%s1306_s1 + $0x98] sm:$0xff]  ;;  %v1045_v19 = vld [vmem:[%s1306_s1 + $0x10] sm:$0xff] }
  0x11   : > { %328 = vmatpush.bf16.msra.mxu1 %v1049_v5  ;;  %v1063_v14 = vld [vmem:[%s1306_s1 + $0xa0] sm:$0xff]  ;;  %v1061_v20 = vld [vmem:[%s1306_s1 + $0x90] sm:$0xff]  ;;  %v1052_v21 = vld [vmem:[%s1306_s1 + $0x48] sm:$0xff] }
  0x12   : > { %410 = vmatpush.bf16.msra.mxu2 %v1065_v6  ;;  %v1044_v22 = vld [vmem:[%s1306_s1 + $0x8] sm:$0xff]  ;;  %v1051_v24 = vld [vmem:[%s1306_s1 + $0x40] sm:$0xff]  ;;  %v1082_v34 = vld [vmem:[%s1306_s1 + $0x138] sm:$0xff] }
  0x13   : > { %v1060_v23 = vld [vmem:[%s1306_s1 + $0x88] sm:$0xff]  ;;  %v1043_v25 = vld [vmem:[%s1306_s1] sm:$0xff]  ;;  %527 = vmatpush.bf16.msra.mxu3 %v1082_v34  ;;  %v1081_v35 = vld [vmem:[%s1306_s1 + $0x130] sm:$0xff] }
  0x14   : > { %267 = vmatpush.bf16.msra.mxu0 %v1056_v7  ;;  %v1059_v28 = vld [vmem:[%s1306_s1 + $0x80] sm:$0xff]  ;;  %v1074_v36 = vld [vmem:[%s1306_s1 + $0xf8] sm:$0xff]  ;;  %v1080_v38 = vld [vmem:[%s1306_s1 + $0x128] sm:$0xff] }
  0x15   : > { %329 = vmatpush.bf16.msra.mxu1 %v1048_v8  ;;  %v1090_v37 = vld [vmem:[%s1306_s1 + $0x178] sm:$0xff]  ;;  %v1073_v39 = vld [vmem:[%s1306_s1 + $0xf0] sm:$0xff]  ;;  %v1079_v41 = vld [vmem:[%s1306_s1 + $0x120] sm:$0xff] }
  0x16   : > { %411 = vmatpush.bf16.msra.mxu2 %v1064_v9  ;;  %v178_v26 = vld [vmem:[#allocation2] sm:$0xff]  ;;  %v1089_v40 = vld [vmem:[%s1306_s1 + $0x170] sm:$0xff]  ;;  %v1072_v42 = vld [vmem:[%s1306_s1 + $0xe8] sm:$0xff] }
  0x17   : > { %v179_v27 = vld [vmem:[#allocation2 + $0x8] sm:$0xff]  ;;  %528 = vmatpush.bf16.msra.mxu3 %v1081_v35  ;;  %v1078_v44 = vld [vmem:[%s1306_s1 + $0x118] sm:$0xff]  ;;  %v1071_v45 = vld [vmem:[%s1306_s1 + $0xe0] sm:$0xff] }
  0x18   : > { %268 = vmatpush.bf16.msra.mxu0 %v1055_v12  ;;  %v341_v29 = vld [vmem:[#allocation2 + $0x2] sm:$0xff]  ;;  %v342_v30 = vld [vmem:[#allocation2 + $0xa] sm:$0xff]  ;;  %v180_v32 = vpack.c.bf16 %v179_v27, %v178_v26  ;;  %v1070_v48 = vld [vmem:[%s1306_s1 + $0xd8] sm:$0xff] }
  0x19   : > { %330 = vmatpush.bf16.msra.mxu1 %v1047_v13  ;;  %v343_v33 = vpack.c.bf16 %v342_v30, %v341_v29  ;;  %v1088_v43 = vld [vmem:[%s1306_s1 + $0x168] sm:$0xff]  ;;  %v1087_v46 = vld [vmem:[%s1306_s1 + $0x160] sm:$0xff]  ;;  %v1077_v47 = vld [vmem:[%s1306_s1 + $0x110] sm:$0xff] }
  0x1a   : > { %412 = vmatpush.bf16.msra.mxu2 %v1063_v14  ;;  %v1086_v49 = vld [vmem:[%s1306_s1 + $0x158] sm:$0xff]  ;;  %v1076_v50 = vld [vmem:[%s1306_s1 + $0x108] sm:$0xff]  ;;  %v1069_v51 = vld [vmem:[%s1306_s1 + $0xd0] sm:$0xff] }
  0x1b   : > { %529 = vmatpush.bf16.msra.mxu3 %v1080_v38  ;;  %v1085_v52 = vld [vmem:[%s1306_s1 + $0x150] sm:$0xff]  ;;  %v1075_v53 = vld [vmem:[%s1306_s1 + $0x100] sm:$0xff]  ;;  %v1068_v54 = vld [vmem:[%s1306_s1 + $0xc8] sm:$0xff] }
  0x1c   : > { %269 = vmatpush.bf16.msra.mxu0 %v1054_v15  ;;  %v1084_v55 = vld [vmem:[%s1306_s1 + $0x148] sm:$0xff]  ;;  %v1067_v56 = vld [vmem:[%s1306_s1 + $0xc0] sm:$0xff] }
  0x1d   : > { %331 = vmatpush.bf16.msra.mxu1 %v1046_v16  ;;  %v1083_v57 = vld [vmem:[%s1306_s1 + $0x140] sm:$0xff] }
  0x1e   : > { %413 = vmatpush.bf16.msra.mxu2 %v1062_v17  ;;  %v1100_v61 = vld [vmem:[%s1307_s2] ss:$0 sm:$0xff] }
  0x1f   : > { %530 = vmatpush.bf16.msra.mxu3 %v1079_v41 }
  0x20   : > { %270 = vmatpush.bf16.msra.mxu0 %v1053_v18 }
  0x21   : > { %332 = vmatpush.bf16.msra.mxu1 %v1045_v19 }
  0x22   : > { %414 = vmatpush.bf16.msra.mxu2 %v1061_v20 }
  0x23   : > { %531 = vmatpush.bf16.msra.mxu3 %v1078_v44 }
  0x24   : > { %271 = vmatpush.bf16.msra.mxu0 %v1052_v21 }
  0x25   : > { %333 = vmatpush.bf16.msra.mxu1 %v1044_v22  ;;  %v1101_v22 = vld [vmem:[%s1307_s2 + $0x1] ss:$0 sm:$0xff] }
  0x26   : > { %415 = vmatpush.bf16.msra.mxu2 %v1060_v23 }
  0x27   : > { %532 = vmatpush.bf16.msra.mxu3 %v1077_v47 }
  0x28   : > { %272 = vmatpush.bf16.msra.mxu0 %v1051_v24 }
  0x29   : > { %334 = vmatpush.bf16.msra.mxu1 %v1043_v25 }
  0x2a   : > { %416 = vmatpush.bf16.msra.mxu2 %v1059_v28 }
  0x2b   : > { %273 = vmatmul.bf16.vlgmr.msra.gmra.mxu0 %v199_v31  ;;  %533 = vmatpush.bf16.msra.mxu3 %v1076_v50 }
  0x2c   : > { %335 = vmatmul.bf16.vlgmr.msra.gmra.mxu1 %v180_v32  ;;  %589 = vmatpush.bf16.msrb.mxu0 %v1074_v36 }
  0x2d   : > { %417 = vmatmul.bf16.vlgmr.msra.gmra.mxu2 %v343_v33  ;;  %671 = vmatpush.bf16.msrb.mxu1 %v1090_v37 }
  0x2f   : > { %534 = vmatpush.bf16.msra.mxu3 %v1075_v53 }
  0x30   : > { %590 = vmatpush.bf16.msrb.mxu0 %v1073_v39 }
  0x31   : > { %672 = vmatpush.bf16.msrb.mxu1 %v1089_v40 }
  0x34   : > { %591 = vmatpush.bf16.msrb.mxu0 %v1072_v42 }
  0x35   : > { %673 = vmatpush.bf16.msrb.mxu1 %v1088_v43 }
  0x38   : > { %592 = vmatpush.bf16.msrb.mxu0 %v1071_v45 }
  0x39   : > { %674 = vmatpush.bf16.msrb.mxu1 %v1087_v46 }
  0x3c   : > { %593 = vmatpush.bf16.msrb.mxu0 %v1070_v48 }
  0x3d   : > { %675 = vmatpush.bf16.msrb.mxu1 %v1086_v49 }
  0x40   : > { %594 = vmatpush.bf16.msrb.mxu0 %v1069_v51 }
  0x41   : > { %676 = vmatpush.bf16.msrb.mxu1 %v1085_v52 }
  0x44   : > { %595 = vmatpush.bf16.msrb.mxu0 %v1068_v54 }
  0x45   : > { %677 = vmatpush.bf16.msrb.mxu1 %v1084_v55 }
  0x48   : > { %596 = vmatpush.bf16.msrb.mxu0 %v1067_v56 }
  0x49   : > { %678 = vmatpush.bf16.msrb.mxu1 %v1083_v57 }
  0xa8   : > { %v274_v58 = vpop.f32.mrf.mxu0 }
  0xa9   : > { %v336_v59 = vpop.f32.mrf.mxu1 }
  0xaa   : > { %v337_v60 = vadd.f32 %v336_v59, %v274_v58 }
  0xb0   : > { %v418_v62 = vpop.f32.mrf.mxu2  ;;  %v276_v1 = vpop.f32.mrf.mxu0 }
  0xb1   : > { %v423_v63 = vadd.f32 %v418_v62, %v337_v60  ;;  %v338_v2 = vpop.f32.mrf.mxu1 }
  0xb2   : > { %v339_v5 = vadd.f32 %v338_v2, %v276_v1 }
  0xb3   : > { %v429_v0 = vadd.f32 %v1100_v61, %v423_v63 }
  0xb5   : > { %vm431_vm0 = vcmp.ge.f32.partialorder %v429_v0, 0.0  ;;  %v433_v3 = vmul.f32 0.01, %v429_v0 }
  0xb7   : > { %v435_v4 = vsel %vm431_vm0, %v429_v0, %v433_v3 }
  0xb8   : > { %437 = vst [vmem:[#allocation2 + $0x1] sm:$0xff] %v435_v4  ;;  %v420_v6 = vpop.f32.mrf.mxu2 }
  0xb9   : > { %v424_v7 = vadd.f32 %v420_v6, %v339_v5 }
  0xbb   : > { %v430_v8 = vadd.f32 %v1100_v61, %v424_v7 }
  0xbd   : > { %vm432_vm1 = vcmp.ge.f32.partialorder %v430_v8, 0.0  ;;  %v434_v9 = vmul.f32 0.01, %v430_v8 }
  0xbf   : > { %v436_v10 = vsel %vm432_vm1, %v430_v8, %v434_v9  ;;  %v439_v12 = vld [vmem:[#allocation2] sm:$0xff] }
  0xc0   : > { %438 = vst [vmem:[#allocation2 + $0x9] sm:$0xff] %v436_v10  ;;  %v461_v11 = vpack.c.bf16 %v436_v10, %v435_v4 }
  0xc2   : > { %535 = vmatmul.bf16.vlgmr.msra.gmra.mxu3 %v461_v11 }
  0xc7   : > { %v440_v13 = vld [vmem:[#allocation2 + $0x8] sm:$0xff] }
  0xc8   : > { %v603_v14 = vld [vmem:[#allocation2 + $0x2] sm:$0xff]  ;;  %v604_v15 = vld [vmem:[#allocation2 + $0xa] sm:$0xff]  ;;  %v441_v16 = vpack.c.bf16 %v440_v13, %v439_v12 }
  0xc9   : > { %v605_v17 = vpack.c.bf16 %v604_v15, %v603_v14 }
  0xca   : > { %597 = vmatmul.bf16.vlgmr.msrb.gmra.mxu0 %v441_v16 }
  0xcb   : > { %679 = vmatmul.bf16.vlgmr.msrb.gmra.mxu1 %v605_v17 }
 0x145   : > { %v536_v18 = vpop.f32.mrf.mxu3 }
 0x147   : > { %v598_v19 = vpop.f32.mrf.mxu0 }
 0x148   : > { %v680_v20 = vpop.f32.mrf.mxu1  ;;  %v599_v21 = vadd.f32 %v598_v19, %v536_v18 }
 0x14a   : > { %v685_v23 = vadd.f32 %v680_v20, %v599_v21 }
 0x14c   : > { %v692_v24 = vadd.f32 %v1101_v22, %v685_v23 }
 0x14d   : > { %v538_v27 = vpop.f32.mrf.mxu3 }
 0x14e   : > { %vm694_vm2 = vcmp.ge.f32.partialorder %v692_v24, 0.0  ;;  %v696_v25 = vmul.f32 0.01, %v692_v24 }
 0x14f   : > { %v600_v26 = vpop.f32.mrf.mxu0 }
 0x150   : > { %v698_v28 = vsel %vm694_vm2, %v692_v24, %v696_v25  ;;  %v601_v29 = vadd.f32 %v600_v26, %v538_v27  ;;  %v682_v30 = vpop.f32.mrf.mxu1 }
 0x151   : > { %700 = vst [vmem:[%s170_s23] sm:$0xff] %v698_v28 }
 0x152   : > { %v686_v31 = vadd.f32 %v682_v30, %v601_v29 }
 0x154   : > { %v693_v32 = vadd.f32 %v1101_v22, %v686_v31 }
 0x156   : > { %vm695_vm3 = vcmp.ge.f32.partialorder %v693_v32, 0.0  ;;  %v697_v33 = vmul.f32 0.01, %v693_v32 }
 0x158   : > { %v699_v34 = vsel %vm695_vm3, %v693_v32, %v697_v33 }
 0x159   : > { %701 = vst [vmem:[%s170_s23 + $0x8] sm:$0xff] %v699_v34 }
 0x15a PF: > { %s13_s12 = sadd.s32 1, %s1108_s12  }
 0x15b   : > { %p10_p4 = scmp.ge.s32.totalorder %s13_s12, 4  }
 0x15d   :  { %12 = sbr.rel (!%p10_p4) target bundleno = 1 (0x1), region = 68 }

</bundles_post_ra>
